<compile_context>
chip_gen: v7x
topology: tpu7x:2x2x1
jax: 0.10.0
libtpu: 0.0.40
codegen_flags: <defaults>
</compile_context>

<pallas_src>
import jax
import jax.numpy as jnp
from jax.experimental import pallas as pl
from jax.experimental.pallas import tpu as pltpu


def _round_up(x, m):
    return (x + m - 1) // m * m


def gru_chunk_kernel(maxlen_ref, x_ref, wih_ref, whh_ref, bih_ref, bhh_ref,
                     len_ref, out_ref, h_ref, gi_ref):
    """Grid = (batch_blocks, time_chunks). One invocation = Tc timesteps of one batch block.

    maxlen_ref : SMEM (1,) int32      max sequence length in the batch (scalar prefetch)
    x_ref      : (Tc, Bb, E)   bf16   embedded inputs for this time chunk
    wih_ref    : (E, 3*Hp)     bf16   input->hidden weights, gates [r|z|n], each padded to Hp
    whh_ref    : (Hp, 3*Hp)    bf16   hidden->hidden weights, same layout
    bih_ref    : (1, 3*Hp)     f32
    bhh_ref    : (1, 3*Hp)     f32
    len_ref    : (Bb, 1)       int32  sequence lengths
    out_ref    : (Bb, Hp)      f32    hidden state at the last valid timestep
    h_ref      : (Bb, Hp)      f32    VMEM scratch: carried hidden state
    gi_ref     : (Tc, Bb, 3Hp) f32    VMEM scratch: chunk-wide input projection
    """
    c = pl.program_id(1)
    Tc, Bb, E = x_ref.shape
    Hp = h_ref.shape[-1]

    @pl.when(c == 0)
    def _init():
        h_ref[...] = jnp.zeros_like(h_ref)

    # Skip chunks that lie entirely in the padded tail of every sequence.
    @pl.when(c * Tc < maxlen_ref[0])
    def _compute():
        # Input projection hoisted out of the recurrence:
        # one (Tc*Bb, E) @ (E, 3Hp) MXU matmul for the whole chunk.
        x_flat = x_ref[...].reshape(Tc * Bb, E)
        gi = jnp.dot(x_flat, wih_ref[...],
                     preferred_element_type=jnp.float32) + bih_ref[...]
        gi_ref[...] = gi.reshape(Tc, Bb, 3 * Hp)

        lens = len_ref[...]                         # (Bb, 1) int32
        whh = whh_ref[...]                          # (Hp, 3Hp) bf16
        bhh = bhh_ref[...]                          # (1, 3Hp)  f32

        def step(t, h):
            gi_t = gi_ref[t]                        # (Bb, 3Hp) f32
            gh = jnp.dot(h.astype(whh.dtype), whh,
                         preferred_element_type=jnp.float32) + bhh
            # 128-lane-aligned gate slices (Hp is a multiple of 128).
            r = jax.nn.sigmoid(gi_t[:, :Hp] + gh[:, :Hp])
            z = jax.nn.sigmoid(gi_t[:, Hp:2 * Hp] + gh[:, Hp:2 * Hp])
            n = jnp.tanh(gi_t[:, 2 * Hp:] + r * gh[:, 2 * Hp:])
            h_new = (1.0 - z) * n + z * h
            # Freeze h once past the end of each sequence; the frozen value is
            # exactly the hidden state at the last valid timestep (== _select_last).
            valid = (c * Tc + t) < lens             # (Bb, 1)
            return jnp.where(valid, h_new, h)

        h_ref[...] = jax.lax.fori_loop(0, Tc, step, h_ref[...], unroll=True)

    @pl.when(c == pl.num_programs(1) - 1)
    def _emit():
        out_ref[...] = h_ref[...]


def _pack_gate_weights(w, H, Hp, dtype):
    """w: (3H, in_dim) PyTorch layout, gates [r, z, n] -> (in_dim, 3*Hp), each gate padded."""
    in_dim = w.shape[1]
    w3 = w.reshape(3, H, in_dim)
    w3 = jnp.transpose(w3, (2, 0, 1))                    # (in_dim, 3, H)
    w3 = jnp.pad(w3, ((0, 0), (0, 0), (0, Hp - H)))      # (in_dim, 3, Hp)
    return w3.reshape(in_dim, 3 * Hp).astype(dtype)


def _pack_gate_bias(b, H, Hp):
    b3 = jnp.pad(b.reshape(3, H), ((0, 0), (0, Hp - H)))
    return b3.reshape(1, 3 * Hp).astype(jnp.float32)


def uniskip_forward(tokens, emb_table, w_ih, w_hh, b_ih, b_hh,
                    *, time_chunk=8, batch_block=8):
    """tokens: (B, T) int32, zero-padded. Returns (B, H) float32."""
    B, T = tokens.shape
    E = emb_table.shape[1]
    H = w_hh.shape[1]

    Hp = _round_up(H, 128)                 # lane-aligned hidden size
    Bb = batch_block                       # sublane-aligned batch block
    Bp = _round_up(max(B, Bb), Bb)
    Tc = time_chunk
    Tp = _round_up(T, Tc)

    # _process_lengths: T - #padding(0) tokens per row.
    lengths = (T - jnp.sum(tokens == 0, axis=1)).astype(jnp.int32)        # (B,)
    max_len = jnp.max(lengths).reshape(1).astype(jnp.int32)               # (1,)

    # Pad batch (extra rows are all-padding, length 0) and time (extra steps are skipped).
    tokens_p = jnp.zeros((Bp, Tp), dtype=tokens.dtype).at[:B, :T].set(tokens)
    lengths_p = jnp.zeros((Bp, 1), dtype=jnp.int32).at[:B, 0].set(lengths)

    # Time-major embedding gather (no (B,T,E) materialize + transpose round trip).
    x_tbe = jnp.take(emb_table, tokens_p.T, axis=0).astype(jnp.bfloat16)  # (Tp, Bp, E)

    # Lane-aligned gate layout, bf16 operands, f32 accumulation inside the kernel.
    wih_p = _pack_gate_weights(w_ih, H, Hp, jnp.bfloat16)                 # (E, 3Hp)
    whh_p = _pack_gate_weights(w_hh, H, Hp, jnp.bfloat16)                 # (H, 3Hp)
    whh_p = jnp.pad(whh_p, ((0, Hp - H), (0, 0)))                         # (Hp, 3Hp)
    bih_p = _pack_gate_bias(b_ih, H, Hp)
    bhh_p = _pack_gate_bias(b_hh, H, Hp)

    grid = (Bp // Bb, Tp // Tc)

    out = pl.pallas_call(
        gru_chunk_kernel,
        out_shape=jax.ShapeDtypeStruct((Bp, Hp), jnp.float32),
        grid_spec=pltpu.PrefetchScalarGridSpec(
            num_scalar_prefetch=1,                   # max_len -> SMEM
            grid=grid,
            in_specs=[
                pl.BlockSpec((Tc, Bb, E), lambda b, c, ml: (c, b, 0)),    # x chunk
                pl.BlockSpec((E, 3 * Hp), lambda b, c, ml: (0, 0)),       # W_ih^T
                pl.BlockSpec((Hp, 3 * Hp), lambda b, c, ml: (0, 0)),      # W_hh^T
                pl.BlockSpec((1, 3 * Hp), lambda b, c, ml: (0, 0)),       # b_ih
                pl.BlockSpec((1, 3 * Hp), lambda b, c, ml: (0, 0)),       # b_hh
                pl.BlockSpec((Bb, 1), lambda b, c, ml: (b, 0)),           # lengths
            ],
            out_specs=pl.BlockSpec((Bb, Hp), lambda b, c, ml: (b, 0)),
            scratch_shapes=[
                pltpu.VMEM((Bb, Hp), jnp.float32),           # carried hidden state
                pltpu.VMEM((Tc, Bb, 3 * Hp), jnp.float32),   # chunk input projection
            ],
        ),
        compiler_params=pltpu.CompilerParams(
            # Batch blocks are independent (megacore-parallel on v7x); time is a serial
            # recurrence and must stay "arbitrary".
            dimension_semantics=("parallel", "arbitrary"),
        ),
    )(max_len, x_tbe, wih_p, whh_p, bih_p, bhh_p, lengths_p)

    return out[:B, :H]


def uniskip_reference(tokens, emb_table, w_ih, w_hh, b_ih, b_hh):
    """Pure-JAX f32 reference (lax.scan) matching PyTorch nn.GRU equations."""
    B, T = tokens.shape
    H = w_hh.shape[1]
    lengths = (T - jnp.sum(tokens == 0, axis=1)).astype(jnp.int32)
    x = jnp.take(emb_table, tokens, axis=0)            # (B, T, E)
    x_tbe = jnp.transpose(x, (1, 0, 2))                # (T, B, E)
    wih_t, whh_t = w_ih.T, w_hh.T

    def step(h, x_t):
        gi = x_t @ wih_t + b_ih
        gh = h @ whh_t + b_hh
        r = jax.nn.sigmoid(gi[:, :H] + gh[:, :H])
        z = jax.nn.sigmoid(gi[:, H:2 * H] + gh[:, H:2 * H])
        n = jnp.tanh(gi[:, 2 * H:] + r * gh[:, 2 * H:])
        h_new = (1.0 - z) * n + z * h
        return h_new, h_new

    _, hs = jax.lax.scan(step, jnp.zeros((B, H), jnp.float32), x_tbe)  # (T, B, H)
    return hs[lengths - 1, jnp.arange(B)]              # (B, H)


if __name__ == "__main__":
    # Small, module-consistent shapes (production: E=620, H=2400, vocab=80000).
    B, T = 4, 12          # batch, max sequence length (tail chunk is all padding -> skipped)
    E, H = 32, 64         # input_size (embedding dim), output_size (GRU hidden)
    VOCAB = 50            # embedding table has VOCAB + 1 rows, row 0 = padding

    key = jax.random.PRNGKey(0)
    k_emb, k_wih, k_whh, k_bih, k_bhh, k_tok = jax.random.split(key, 6)

    emb_table = 0.1 * jax.random.normal(k_emb, (VOCAB + 1, E), dtype=jnp.float32)
    emb_table = emb_table.at[0].set(0.0)                       # padding_idx=0

    bound = 1.0 / jnp.sqrt(jnp.float32(H))
    w_ih = jax.random.uniform(k_wih, (3 * H, E), jnp.float32, -bound, bound)
    w_hh = jax.random.uniform(k_whh, (3 * H, H), jnp.float32, -bound, bound)
    b_ih = jax.random.uniform(k_bih, (3 * H,), jnp.float32, -bound, bound)
    b_hh = jax.random.uniform(k_bhh, (3 * H,), jnp.float32, -bound, bound)

    # Token ids in [1, VOCAB], zero-padded tails; lengths sorted descending
    # (pack_padded_sequence style).
    tokens = jax.random.randint(k_tok, (B, T), 1, VOCAB + 1, dtype=jnp.int32)
    seq_lengths = jnp.array([8, 6, 5, 3], dtype=jnp.int32)
    col = jnp.arange(T, dtype=jnp.int32)[None, :]
    tokens = jnp.where(col < seq_lengths[:, None], tokens, 0)

    out = uniskip_forward(tokens, emb_table, w_ih, w_hh, b_ih, b_hh,
                          time_chunk=4, batch_block=8)
    out = jax.block_until_ready(out)

    ref = uniskip_reference(tokens, emb_table, w_ih, w_hh, b_ih, b_hh)
    assert out.shape == (B, H)
    # bf16 matmul operands -> compare with a modest tolerance against the f32 reference.
    assert jnp.allclose(out, ref, atol=2e-2, rtol=2e-2), (
        f"mismatch vs reference: max abs err {float(jnp.max(jnp.abs(out - ref)))}")

    print("KERNEL_OK")
</pallas_src>

<mosaic_0001>
module attributes {stable_mosaic.version = 11 : i64} {
  func.func @gru_chunk_kernel(%arg0: i32, %arg1: i32, %arg2: memref<1xi32, #tpu.memory_space<smem>>, %arg3: memref<4x8x32xbf16, #tpu.memory_space<vmem>>, %arg4: memref<32x384xbf16, #tpu.memory_space<vmem>>, %arg5: memref<128x384xbf16, #tpu.memory_space<vmem>>, %arg6: memref<1x384xf32, #tpu.memory_space<vmem>>, %arg7: memref<1x384xf32, #tpu.memory_space<vmem>>, %arg8: memref<8x1xi32, #tpu.memory_space<vmem>>, %arg9: memref<8x128xf32, #tpu.memory_space<vmem>>, %arg10: memref<8x128xf32, #tpu.memory_space<vmem>>, %arg11: memref<4x8x384xf32, #tpu.memory_space<vmem>>) attributes {dimension_semantics = [#tpu.dimension_semantics<parallel>, #tpu.dimension_semantics<arbitrary>], iteration_bounds = array<i64: 1, 3>, scalar_prefetch = 1 : i64, scratch_operands = 2 : i64, tpu.core_type = #tpu.core_type<tc>, window_params = [{transform_indices = @transform_0, window_bounds = array<i64: 4, 8, 32>}, {pipeline_mode = #tpu.pipeline_mode<synchronous>, transform_indices = @transform_1, window_bounds = array<i64: 32, 384>}, {pipeline_mode = #tpu.pipeline_mode<synchronous>, transform_indices = @transform_2, window_bounds = array<i64: 128, 384>}, {pipeline_mode = #tpu.pipeline_mode<synchronous>, transform_indices = @transform_3, window_bounds = array<i64: 1, 384>}, {pipeline_mode = #tpu.pipeline_mode<synchronous>, transform_indices = @transform_4, window_bounds = array<i64: 1, 384>}, {transform_indices = @transform_5, window_bounds = array<i64: 8, 1>}, {transform_indices = @transform_6, window_bounds = array<i64: 8, 128>}]} {
    %c0_i32 = arith.constant 0 : i32
    %0 = arith.cmpi eq, %arg1, %c0_i32 : i32
    %1 = arith.extui %0 : i1 to i32
    %c0_i32_0 = arith.constant 0 : i32
    %2 = arith.cmpi ne, %1, %c0_i32_0 : i32
    scf.if %2 {
      %cst = arith.constant 0.000000e+00 : f32
      %11 = vector.broadcast %cst : f32 to vector<8x128xf32>
      %c0_3 = arith.constant 0 : index
      %c0_4 = arith.constant 0 : index
      %12 = vector.load %arg10[%c0_3, %c0_4] : memref<8x128xf32, #tpu.memory_space<vmem>>, vector<8x128xf32>
      tpu.vector_store %arg10[%c0_3, %c0_4], %11 {strides = array<i32>} : memref<8x128xf32, #tpu.memory_space<vmem>>, vector<8x128xf32>,
    } else {
    }
    %c4_i32 = arith.constant 4 : i32
    %3 = arith.muli %arg1, %c4_i32 : i32
    %c0 = arith.constant 0 : index
    %4 = memref.load %arg2[%c0] : memref<1xi32, #tpu.memory_space<smem>>
    %5 = arith.cmpi slt, %3, %4 : i32
    %6 = arith.extui %5 : i1 to i32
    %c0_i32_1 = arith.constant 0 : i32
    %7 = arith.cmpi ne, %6, %c0_i32_1 : i32
    scf.if %7 {
      %c0_3 = arith.constant 0 : index
      %c0_4 = arith.constant 0 : index
      %c0_5 = arith.constant 0 : index
      %11 = vector.load %arg3[%c0_3, %c0_4, %c0_5] : memref<4x8x32xbf16, #tpu.memory_space<vmem>>, vector<4x8x32xbf16>
      %12 = vector.shape_cast %11 : vector<4x8x32xbf16> to vector<32x32xbf16>
      %c0_6 = arith.constant 0 : index
      %c0_7 = arith.constant 0 : index
      %13 = vector.load %arg4[%c0_6, %c0_7] : memref<32x384xbf16, #tpu.memory_space<vmem>>, vector<32x384xbf16>
      %cst = arith.constant dense<0.000000e+00> : vector<32x384xf32>
      %14 = tpu.matmul %12, %13, %cst {dimension_numbers = #tpu.dot_dimension_numbers<[1], [0], [0], [1], [0, 0, 1, 1], [], []>} : vector<32x32xbf16>, vector<32x384xbf16>, vector<32x384xf32> -> vector<32x384xf32>
      %c0_8 = arith.constant 0 : index
      %c0_9 = arith.constant 0 : index
      %15 = vector.load %arg6[%c0_8, %c0_9] : memref<1x384xf32, #tpu.memory_space<vmem>>, vector<1x384xf32>
      %16 = vector.broadcast %15 : vector<1x384xf32> to vector<32x384xf32>
      %17 = arith.addf %14, %16 : vector<32x384xf32>
      %18 = vector.shape_cast %17 : vector<32x384xf32> to vector<4x8x384xf32>
      %c0_10 = arith.constant 0 : index
      %c0_11 = arith.constant 0 : index
      %c0_12 = arith.constant 0 : index
      %19 = vector.load %arg11[%c0_10, %c0_11, %c0_12] : memref<4x8x384xf32, #tpu.memory_space<vmem>>, vector<4x8x384xf32>
      tpu.vector_store %arg11[%c0_10, %c0_11, %c0_12], %18 {strides = array<i32>} : memref<4x8x384xf32, #tpu.memory_space<vmem>>, vector<4x8x384xf32>,
      %c0_13 = arith.constant 0 : index
      %c0_14 = arith.constant 0 : index
      %20 = vector.load %arg8[%c0_13, %c0_14] : memref<8x1xi32, #tpu.memory_space<vmem>>, vector<8x1xi32>
      %c0_15 = arith.constant 0 : index
      %c0_16 = arith.constant 0 : index
      %21 = vector.load %arg5[%c0_15, %c0_16] : memref<128x384xbf16, #tpu.memory_space<vmem>>, vector<128x384xbf16>
      %c0_17 = arith.constant 0 : index
      %c0_18 = arith.constant 0 : index
      %22 = vector.load %arg7[%c0_17, %c0_18] : memref<1x384xf32, #tpu.memory_space<vmem>>, vector<1x384xf32>
      %c0_19 = arith.constant 0 : index
      %c0_20 = arith.constant 0 : index
      %23 = vector.load %arg10[%c0_19, %c0_20] : memref<8x128xf32, #tpu.memory_space<vmem>>, vector<8x128xf32>
      %c0_i32_21 = arith.constant 0 : i32
      %24 = arith.index_cast %c0_i32_21 : i32 to index
      %c0_22 = arith.constant 0 : index
      %c0_23 = arith.constant 0 : index
      %25 = vector.load %arg11[%24, %c0_22, %c0_23] : memref<4x8x384xf32, #tpu.memory_space<vmem>>, vector<1x8x384xf32>
      %26 = vector.shape_cast %25 : vector<1x8x384xf32> to vector<8x384xf32>
      %27 = arith.truncf %23 : vector<8x128xf32> to vector<8x128xbf16>
      %cst_24 = arith.constant dense<0.000000e+00> : vector<8x384xf32>
      %28 = tpu.matmul %27, %21, %cst_24 {dimension_numbers = #tpu.dot_dimension_numbers<[1], [0], [0], [1], [0, 0, 1, 1], [], []>} : vector<8x128xbf16>, vector<128x384xbf16>, vector<8x384xf32> -> vector<8x384xf32>
      %29 = vector.broadcast %22 : vector<1x384xf32> to vector<8x384xf32>
      %30 = arith.addf %28, %29 : vector<8x384xf32>
      %31 = vector.extract_strided_slice %26 {offsets = [0, 0], sizes = [8, 128], strides = [1, 1]} : vector<8x384xf32> to vector<8x128xf32>
      %32 = vector.extract_strided_slice %30 {offsets = [0, 0], sizes = [8, 128], strides = [1, 1]} : vector<8x384xf32> to vector<8x128xf32>
      %33 = arith.addf %31, %32 : vector<8x128xf32>
      %34 = arith.negf %33 : vector<8x128xf32>
      %35 = math.exp %34 : vector<8x128xf32>
      %cst_25 = arith.constant 1.000000e+00 : f32
      %36 = vector.broadcast %cst_25 : f32 to vector<8x128xf32>
      %37 = arith.addf %36, %35 : vector<8x128xf32>
      %38 = arith.divf %36, %37 : vector<8x128xf32>
      %39 = vector.extract_strided_slice %26 {offsets = [0, 128], sizes = [8, 128], strides = [1, 1]} : vector<8x384xf32> to vector<8x128xf32>
      %40 = vector.extract_strided_slice %30 {offsets = [0, 128], sizes = [8, 128], strides = [1, 1]} : vector<8x384xf32> to vector<8x128xf32>
      %41 = arith.addf %39, %40 : vector<8x128xf32>
      %42 = arith.negf %41 : vector<8x128xf32>
      %43 = math.exp %42 : vector<8x128xf32>
      %cst_26 = arith.constant 1.000000e+00 : f32
      %44 = vector.broadcast %cst_26 : f32 to vector<8x128xf32>
      %45 = arith.addf %44, %43 : vector<8x128xf32>
      %46 = arith.divf %44, %45 : vector<8x128xf32>
      %47 = vector.extract_strided_slice %26 {offsets = [0, 256], sizes = [8, 128], strides = [1, 1]} : vector<8x384xf32> to vector<8x128xf32>
      %48 = vector.extract_strided_slice %30 {offsets = [0, 256], sizes = [8, 128], strides = [1, 1]} : vector<8x384xf32> to vector<8x128xf32>
      %49 = arith.mulf %38, %48 : vector<8x128xf32>
      %50 = arith.addf %47, %49 : vector<8x128xf32>
      %51 = math.tanh %50 : vector<8x128xf32>
      %cst_27 = arith.constant 1.000000e+00 : f32
      %52 = vector.broadcast %cst_27 : f32 to vector<8x128xf32>
      %53 = arith.subf %52, %46 : vector<8x128xf32>
      %54 = arith.mulf %53, %51 : vector<8x128xf32>
      %55 = arith.mulf %46, %23 : vector<8x128xf32>
      %56 = arith.addf %54, %55 : vector<8x128xf32>
      %c4_i32_28 = arith.constant 4 : i32
      %57 = arith.muli %arg1, %c4_i32_28 : i32
      %58 = arith.addi %57, %c0_i32_21 : i32
      %59 = vector.broadcast %58 : i32 to vector<8x1xi32>
      %60 = arith.cmpi slt, %59, %20 : vector<8x1xi32>
      %61 = vector.shape_cast %60 : vector<8x1xi1> to vector<8x1xi1>
      %62 = vector.broadcast %61 : vector<8x1xi1> to vector<8x128xi1>
      %63 = arith.select %62, %56, %23 : vector<8x128xi1>, vector<8x128xf32>
      %c1_i32 = arith.constant 1 : i32
      %64 = arith.index_cast %c1_i32 : i32 to index
      %c0_29 = arith.constant 0 : index
      %c0_30 = arith.constant 0 : index
      %65 = vector.load %arg11[%64, %c0_29, %c0_30] : memref<4x8x384xf32, #tpu.memory_space<vmem>>, vector<1x8x384xf32>
      %66 = vector.shape_cast %65 : vector<1x8x384xf32> to vector<8x384xf32>
      %67 = arith.truncf %63 : vector<8x128xf32> to vector<8x128xbf16>
      %cst_31 = arith.constant dense<0.000000e+00> : vector<8x384xf32>
      %68 = tpu.matmul %67, %21, %cst_31 {dimension_numbers = #tpu.dot_dimension_numbers<[1], [0], [0], [1], [0, 0, 1, 1], [], []>} : vector<8x128xbf16>, vector<128x384xbf16>, vector<8x384xf32> -> vector<8x384xf32>
      %69 = vector.broadcast %22 : vector<1x384xf32> to vector<8x384xf32>
      %70 = arith.addf %68, %69 : vector<8x384xf32>
      %71 = vector.extract_strided_slice %66 {offsets = [0, 0], sizes = [8, 128], strides = [1, 1]} : vector<8x384xf32> to vector<8x128xf32>
      %72 = vector.extract_strided_slice %70 {offsets = [0, 0], sizes = [8, 128], strides = [1, 1]} : vector<8x384xf32> to vector<8x128xf32>
      %73 = arith.addf %71, %72 : vector<8x128xf32>
      %74 = arith.negf %73 : vector<8x128xf32>
      %75 = math.exp %74 : vector<8x128xf32>
      %cst_32 = arith.constant 1.000000e+00 : f32
      %76 = vector.broadcast %cst_32 : f32 to vector<8x128xf32>
      %77 = arith.addf %76, %75 : vector<8x128xf32>
      %78 = arith.divf %76, %77 : vector<8x128xf32>
      %79 = vector.extract_strided_slice %66 {offsets = [0, 128], sizes = [8, 128], strides = [1, 1]} : vector<8x384xf32> to vector<8x128xf32>
      %80 = vector.extract_strided_slice %70 {offsets = [0, 128], sizes = [8, 128], strides = [1, 1]} : vector<8x384xf32> to vector<8x128xf32>
      %81 = arith.addf %79, %80 : vector<8x128xf32>
      %82 = arith.negf %81 : vector<8x128xf32>
      %83 = math.exp %82 : vector<8x128xf32>
      %cst_33 = arith.constant 1.000000e+00 : f32
      %84 = vector.broadcast %cst_33 : f32 to vector<8x128xf32>
      %85 = arith.addf %84, %83 : vector<8x128xf32>
      %86 = arith.divf %84, %85 : vector<8x128xf32>
      %87 = vector.extract_strided_slice %66 {offsets = [0, 256], sizes = [8, 128], strides = [1, 1]} : vector<8x384xf32> to vector<8x128xf32>
      %88 = vector.extract_strided_slice %70 {offsets = [0, 256], sizes = [8, 128], strides = [1, 1]} : vector<8x384xf32> to vector<8x128xf32>
      %89 = arith.mulf %78, %88 : vector<8x128xf32>
      %90 = arith.addf %87, %89 : vector<8x128xf32>
      %91 = math.tanh %90 : vector<8x128xf32>
      %cst_34 = arith.constant 1.000000e+00 : f32
      %92 = vector.broadcast %cst_34 : f32 to vector<8x128xf32>
      %93 = arith.subf %92, %86 : vector<8x128xf32>
      %94 = arith.mulf %93, %91 : vector<8x128xf32>
      %95 = arith.mulf %86, %63 : vector<8x128xf32>
      %96 = arith.addf %94, %95 : vector<8x128xf32>
      %c4_i32_35 = arith.constant 4 : i32
      %97 = arith.muli %arg1, %c4_i32_35 : i32
      %98 = arith.addi %97, %c1_i32 : i32
      %99 = vector.broadcast %98 : i32 to vector<8x1xi32>
      %100 = arith.cmpi slt, %99, %20 : vector<8x1xi32>
      %101 = vector.shape_cast %100 : vector<8x1xi1> to vector<8x1xi1>
      %102 = vector.broadcast %101 : vector<8x1xi1> to vector<8x128xi1>
      %103 = arith.select %102, %96, %63 : vector<8x128xi1>, vector<8x128xf32>
      %c2_i32_36 = arith.constant 2 : i32
      %104 = arith.index_cast %c2_i32_36 : i32 to index
      %c0_37 = arith.constant 0 : index
      %c0_38 = arith.constant 0 : index
      %105 = vector.load %arg11[%104, %c0_37, %c0_38] : memref<4x8x384xf32, #tpu.memory_space<vmem>>, vector<1x8x384xf32>
      %106 = vector.shape_cast %105 : vector<1x8x384xf32> to vector<8x384xf32>
      %107 = arith.truncf %103 : vector<8x128xf32> to vector<8x128xbf16>
      %cst_39 = arith.constant dense<0.000000e+00> : vector<8x384xf32>
      %108 = tpu.matmul %107, %21, %cst_39 {dimension_numbers = #tpu.dot_dimension_numbers<[1], [0], [0], [1], [0, 0, 1, 1], [], []>} : vector<8x128xbf16>, vector<128x384xbf16>, vector<8x384xf32> -> vector<8x384xf32>
      %109 = vector.broadcast %22 : vector<1x384xf32> to vector<8x384xf32>
      %110 = arith.addf %108, %109 : vector<8x384xf32>
      %111 = vector.extract_strided_slice %106 {offsets = [0, 0], sizes = [8, 128], strides = [1, 1]} : vector<8x384xf32> to vector<8x128xf32>
      %112 = vector.extract_strided_slice %110 {offsets = [0, 0], sizes = [8, 128], strides = [1, 1]} : vector<8x384xf32> to vector<8x128xf32>
      %113 = arith.addf %111, %112 : vector<8x128xf32>
      %114 = arith.negf %113 : vector<8x128xf32>
      %115 = math.exp %114 : vector<8x128xf32>
      %cst_40 = arith.constant 1.000000e+00 : f32
      %116 = vector.broadcast %cst_40 : f32 to vector<8x128xf32>
      %117 = arith.addf %116, %115 : vector<8x128xf32>
      %118 = arith.divf %116, %117 : vector<8x128xf32>
      %119 = vector.extract_strided_slice %106 {offsets = [0, 128], sizes = [8, 128], strides = [1, 1]} : vector<8x384xf32> to vector<8x128xf32>
      %120 = vector.extract_strided_slice %110 {offsets = [0, 128], sizes = [8, 128], strides = [1, 1]} : vector<8x384xf32> to vector<8x128xf32>
      %121 = arith.addf %119, %120 : vector<8x128xf32>
      %122 = arith.negf %121 : vector<8x128xf32>
      %123 = math.exp %122 : vector<8x128xf32>
      %cst_41 = arith.constant 1.000000e+00 : f32
      %124 = vector.broadcast %cst_41 : f32 to vector<8x128xf32>
      %125 = arith.addf %124, %123 : vector<8x128xf32>
      %126 = arith.divf %124, %125 : vector<8x128xf32>
      %127 = vector.extract_strided_slice %106 {offsets = [0, 256], sizes = [8, 128], strides = [1, 1]} : vector<8x384xf32> to vector<8x128xf32>
      %128 = vector.extract_strided_slice %110 {offsets = [0, 256], sizes = [8, 128], strides = [1, 1]} : vector<8x384xf32> to vector<8x128xf32>
      %129 = arith.mulf %118, %128 : vector<8x128xf32>
      %130 = arith.addf %127, %129 : vector<8x128xf32>
      %131 = math.tanh %130 : vector<8x128xf32>
      %cst_42 = arith.constant 1.000000e+00 : f32
      %132 = vector.broadcast %cst_42 : f32 to vector<8x128xf32>
      %133 = arith.subf %132, %126 : vector<8x128xf32>
      %134 = arith.mulf %133, %131 : vector<8x128xf32>
      %135 = arith.mulf %126, %103 : vector<8x128xf32>
      %136 = arith.addf %134, %135 : vector<8x128xf32>
      %c4_i32_43 = arith.constant 4 : i32
      %137 = arith.muli %arg1, %c4_i32_43 : i32
      %138 = arith.addi %137, %c2_i32_36 : i32
      %139 = vector.broadcast %138 : i32 to vector<8x1xi32>
      %140 = arith.cmpi slt, %139, %20 : vector<8x1xi32>
      %141 = vector.shape_cast %140 : vector<8x1xi1> to vector<8x1xi1>
      %142 = vector.broadcast %141 : vector<8x1xi1> to vector<8x128xi1>
      %143 = arith.select %142, %136, %103 : vector<8x128xi1>, vector<8x128xf32>
      %c3_i32 = arith.constant 3 : i32
      %144 = arith.index_cast %c3_i32 : i32 to index
      %c0_44 = arith.constant 0 : index
      %c0_45 = arith.constant 0 : index
      %145 = vector.load %arg11[%144, %c0_44, %c0_45] : memref<4x8x384xf32, #tpu.memory_space<vmem>>, vector<1x8x384xf32>
      %146 = vector.shape_cast %145 : vector<1x8x384xf32> to vector<8x384xf32>
      %147 = arith.truncf %143 : vector<8x128xf32> to vector<8x128xbf16>
      %cst_46 = arith.constant dense<0.000000e+00> : vector<8x384xf32>
      %148 = tpu.matmul %147, %21, %cst_46 {dimension_numbers = #tpu.dot_dimension_numbers<[1], [0], [0], [1], [0, 0, 1, 1], [], []>} : vector<8x128xbf16>, vector<128x384xbf16>, vector<8x384xf32> -> vector<8x384xf32>
      %149 = vector.broadcast %22 : vector<1x384xf32> to vector<8x384xf32>
      %150 = arith.addf %148, %149 : vector<8x384xf32>
      %151 = vector.extract_strided_slice %146 {offsets = [0, 0], sizes = [8, 128], strides = [1, 1]} : vector<8x384xf32> to vector<8x128xf32>
      %152 = vector.extract_strided_slice %150 {offsets = [0, 0], sizes = [8, 128], strides = [1, 1]} : vector<8x384xf32> to vector<8x128xf32>
      %153 = arith.addf %151, %152 : vector<8x128xf32>
      %154 = arith.negf %153 : vector<8x128xf32>
      %155 = math.exp %154 : vector<8x128xf32>
      %cst_47 = arith.constant 1.000000e+00 : f32
      %156 = vector.broadcast %cst_47 : f32 to vector<8x128xf32>
      %157 = arith.addf %156, %155 : vector<8x128xf32>
      %158 = arith.divf %156, %157 : vector<8x128xf32>
      %159 = vector.extract_strided_slice %146 {offsets = [0, 128], sizes = [8, 128], strides = [1, 1]} : vector<8x384xf32> to vector<8x128xf32>
      %160 = vector.extract_strided_slice %150 {offsets = [0, 128], sizes = [8, 128], strides = [1, 1]} : vector<8x384xf32> to vector<8x128xf32>
      %161 = arith.addf %159, %160 : vector<8x128xf32>
      %162 = arith.negf %161 : vector<8x128xf32>
      %163 = math.exp %162 : vector<8x128xf32>
      %cst_48 = arith.constant 1.000000e+00 : f32
      %164 = vector.broadcast %cst_48 : f32 to vector<8x128xf32>
      %165 = arith.addf %164, %163 : vector<8x128xf32>
      %166 = arith.divf %164, %165 : vector<8x128xf32>
      %167 = vector.extract_strided_slice %146 {offsets = [0, 256], sizes = [8, 128], strides = [1, 1]} : vector<8x384xf32> to vector<8x128xf32>
      %168 = vector.extract_strided_slice %150 {offsets = [0, 256], sizes = [8, 128], strides = [1, 1]} : vector<8x384xf32> to vector<8x128xf32>
      %169 = arith.mulf %158, %168 : vector<8x128xf32>
      %170 = arith.addf %167, %169 : vector<8x128xf32>
      %171 = math.tanh %170 : vector<8x128xf32>
      %cst_49 = arith.constant 1.000000e+00 : f32
      %172 = vector.broadcast %cst_49 : f32 to vector<8x128xf32>
      %173 = arith.subf %172, %166 : vector<8x128xf32>
      %174 = arith.mulf %173, %171 : vector<8x128xf32>
      %175 = arith.mulf %166, %143 : vector<8x128xf32>
      %176 = arith.addf %174, %175 : vector<8x128xf32>
      %c4_i32_50 = arith.constant 4 : i32
      %177 = arith.muli %arg1, %c4_i32_50 : i32
      %178 = arith.addi %177, %c3_i32 : i32
      %179 = vector.broadcast %178 : i32 to vector<8x1xi32>
      %180 = arith.cmpi slt, %179, %20 : vector<8x1xi32>
      %181 = vector.shape_cast %180 : vector<8x1xi1> to vector<8x1xi1>
      %182 = vector.broadcast %181 : vector<8x1xi1> to vector<8x128xi1>
      %183 = arith.select %182, %176, %143 : vector<8x128xi1>, vector<8x128xf32>
      %c4_i32_51 = arith.constant 4 : i32
      %c0_52 = arith.constant 0 : index
      %c0_53 = arith.constant 0 : index
      %184 = vector.load %arg10[%c0_52, %c0_53] : memref<8x128xf32, #tpu.memory_space<vmem>>, vector<8x128xf32>
      tpu.vector_store %arg10[%c0_52, %c0_53], %183 {strides = array<i32>} : memref<8x128xf32, #tpu.memory_space<vmem>>, vector<8x128xf32>,
    } else {
    }
    %c2_i32 = arith.constant 2 : i32
    %8 = arith.cmpi eq, %arg1, %c2_i32 : i32
    %9 = arith.extui %8 : i1 to i32
    %c0_i32_2 = arith.constant 0 : i32
    %10 = arith.cmpi ne, %9, %c0_i32_2 : i32
    scf.if %10 {
      %c0_3 = arith.constant 0 : index
      %c0_4 = arith.constant 0 : index
      %11 = vector.load %arg10[%c0_3, %c0_4] : memref<8x128xf32, #tpu.memory_space<vmem>>, vector<8x128xf32>
      %c0_5 = arith.constant 0 : index
      %c0_6 = arith.constant 0 : index
      %12 = vector.load %arg9[%c0_5, %c0_6] : memref<8x128xf32, #tpu.memory_space<vmem>>, vector<8x128xf32>
      tpu.vector_store %arg9[%c0_5, %c0_6], %11 {strides = array<i32>} : memref<8x128xf32, #tpu.memory_space<vmem>>, vector<8x128xf32>,
    } else {
    }
    return
  }
  func.func @transform_0(%arg0: i32, %arg1: i32, %arg2: memref<1xi32, #tpu.memory_space<smem>>) -> (i32, i32, i32) {
    %c0_i32 = arith.constant 0 : i32
    %c0_i32_0 = arith.constant 0 : i32
    return %arg1, %arg0, %c0_i32 : i32, i32, i32
  }
  func.func @transform_1(%arg0: i32, %arg1: i32, %arg2: memref<1xi32, #tpu.memory_space<smem>>) -> (i32, i32) {
    %c0_i32 = arith.constant 0 : i32
    %c0_i32_0 = arith.constant 0 : i32
    %c0_i32_1 = arith.constant 0 : i32
    return %c0_i32, %c0_i32_0 : i32, i32
  }
  func.func @transform_2(%arg0: i32, %arg1: i32, %arg2: memref<1xi32, #tpu.memory_space<smem>>) -> (i32, i32) {
    %c0_i32 = arith.constant 0 : i32
    %c0_i32_0 = arith.constant 0 : i32
    %c0_i32_1 = arith.constant 0 : i32
    return %c0_i32, %c0_i32_0 : i32, i32
  }
  func.func @transform_3(%arg0: i32, %arg1: i32, %arg2: memref<1xi32, #tpu.memory_space<smem>>) -> (i32, i32) {
    %c0_i32 = arith.constant 0 : i32
    %c0_i32_0 = arith.constant 0 : i32
    %c0_i32_1 = arith.constant 0 : i32
    return %c0_i32, %c0_i32_0 : i32, i32
  }
  func.func @transform_4(%arg0: i32, %arg1: i32, %arg2: memref<1xi32, #tpu.memory_space<smem>>) -> (i32, i32) {
    %c0_i32 = arith.constant 0 : i32
    %c0_i32_0 = arith.constant 0 : i32
    %c0_i32_1 = arith.constant 0 : i32
    return %c0_i32, %c0_i32_0 : i32, i32
  }
  func.func @transform_5(%arg0: i32, %arg1: i32, %arg2: memref<1xi32, #tpu.memory_space<smem>>) -> (i32, i32) {
    %c0_i32 = arith.constant 0 : i32
    %c0_i32_0 = arith.constant 0 : i32
    return %arg0, %c0_i32 : i32, i32
  }
  func.func @transform_6(%arg0: i32, %arg1: i32, %arg2: memref<1xi32, #tpu.memory_space<smem>>) -> (i32, i32) {
    %c0_i32 = arith.constant 0 : i32
    %c0_i32_0 = arith.constant 0 : i32
    return %arg0, %c0_i32 : i32, i32
  }
}

</mosaic_0001>

<bundles_post_ra>
// kernel: tpu_custom_call.1
= control target key start
LH: loop header
LB: loop body
LE: loop exit
PB: predicated region body
PF: predicated region fallthrough
CT: control target
= control target key end

     0   :  { %s2394_s0 = inlined_call_operand.<no memory space> [shape: s32[1], index: 0, kind: input, shape index: {}]   ;;  %s2395_s1 = inlined_call_operand.hbm [shape: bf16[12,8,32], index: 1, kind: input, shape index: {}]   ;;  %s2396_s2 = inlined_call_operand.hbm [shape: bf16[32,384], index: 2, kind: input, shape index: {}]   ;;  %s2397_s3 = inlined_call_operand.hbm [shape: bf16[128,384], index: 3, kind: input, shape index: {}]   ;;  %s2398_s4 = inlined_call_operand.vmem [shape: f32[1,384], index: 4, kind: input, shape index: {}]   ;;  %s2399_s5 = inlined_call_operand.vmem [shape: f32[1,384], index: 5, kind: input, shape index: {}]   ;;  %s2400_s6 = inlined_call_operand.vmem [shape: s32[8,1], index: 6, kind: input, shape index: {}]   ;;  %s2401_s7 = inlined_call_operand.hbm [shape: f32[8,128], index: 7, kind: output, shape index: {}]  }
   0x1   :  { %12 = sst [smem:[#allocation5]] %s2394_s0 }
   0x2   :  { %13 = vsyncpa [#allocation7], 0 }
   0x3   :  { %15 = vsyncpa [#allocation7 + $0x1], 0 }
   0x4   :  { %16 = vsyncpa [#allocation10], 0 }
   0x5   :  { %17 = vsyncpa [#allocation8], 0  ;;  %s1881_s26 = smov 0   ;;  %s1883_s27 = smov 0  }
   0x6   :  { %s1885_s28 = smov 0   ;;  %s1887_s29 = smov 0  }
   0x7   :  { %s1889_s30 = smov 0   ;;  %s1891_s8 = smov 0  }
   0x8 LB: > { %s1285_s0 = sadd.s32 4294967295, %s1824_s8   ;;  %p57_p0 = scmp.ne.s32.totalorder %s1808_s27, %s1804_s26  ;;  %s1824_s8 = sphi %s1891_s8, %s23_s8   ;;  %s1820_s30 = sphi %s1889_s30, %s2419_s30   ;;  %s1816_s29 = sphi %s1887_s29, %s2418_s29   ;;  %s1812_s28 = sphi %s1885_s28, %s2417_s28   ;;  %s1808_s27 = sphi %s1883_s27, %s2416_s27   ;;  %s1804_s26 = sphi %s1881_s26, %s2415_s26  }
   0x9   : > { %p1913_p1 = scmp.eq.s32.totalorder %s1285_s0, 0  ;;  %p1286_p2 = scmp.ge.s32.totalorder %s1824_s8, 1 }
   0xa   : > { %p204_p3 = scmp.lt.s32.totalorder %s1824_s8, 4  ;;  %s1826_s12 = smov [#allocation9]  }
   0xb   : > { %s2406_s9 = scalar_select %p1913_p1, 1, 0 }
   0xc   : > { %p1921_p4 = por %p1913_p1, %p57_p0  ;;  %p1925_p5 = pnand %p1286_p2, %p204_p3 }
   0xd   : > { %s216_s13 = sshll.u32 %s1826_s12, 4  ;;  %s1827_s15 = smov [#allocation11]   ;;  %s217_s13 = int_to_ptr.vmem [resolvable:$true] %s216_s13 }
   0xe   : > { %s2407_s10 = scalar_select %p1921_p4, 1, 0 }
   0xf   : > { %s2408_s11 = scalar_select %p1925_p5, 1, 0 }
  0x10   : > { %p1493_p6 = pneg %p1925_p5  ;;  %s229_s16 = sshll.u32 %s1827_s15, 4  ;;  %s1937_s16 = int_to_ptr.vmem [resolvable:$true] %s229_s16 }
  0x11   : > { %s1654_s19 = scalar_lea.hbm %s2396_s2, 768 }
  0x12   : > { %p1933_p7 = pnand %p1493_p6, %p1913_p1  ;;  %p1655_p8 = scmp.ne.s32.totalorder %s2396_s2, %s1654_s19 }
  0x13   : > { %p1661_p12 = scmp.lt.u32.totalorder %s1654_s19, %s2396_s2 }
  0x14   : > { %p1656_p9 = pneg %p1933_p7 }
  0x16   : > { %p1657_p10 = pnand %p1656_p9, %p1655_p8 }
  0x18   : > { %p1658_p11 = pneg %p1657_p10 }
  0x1a   : > { %p1663_p13 = pnand %p1661_p12, %p1658_p11 }
  0x1c   : > { %1666 = shalt.err (!%p1663_p13)
}
  0x1d   : > { %s1667_s24 = scalar_lea.vmem %s217_s13, 768  ;;  %p1675_p6 = scmp.lt.s32.totalorder %s217_s13, %s217_s13 }
  0x1e   : > { %p1668_p0 = scmp.ne.s32.totalorder %s217_s13, %s1667_s24  ;;  %p1676_p1 = scmp.lt.s32.totalorder %s1667_s24, %s1667_s24 }
  0x20   : > { %p1670_p2 = pnand %p1668_p0, %p1656_p9  ;;  %p1677_p4 = por %p1676_p1, %p1675_p6 }
  0x22   : > { %p1671_p3 = pneg %p1670_p2 }
  0x24   : > { %p1678_p5 = pnand %p1677_p4, %p1671_p3 }
  0x26   : > { %1681 = shalt.err (!%p1678_p5)
}
  0x27   : > { %s1828_s25 = smov 192   ;;  %s1829_s26 = smov 12  }
  0x28   : > { %1496 = dma.hbm_to_vmem [thread:$0]  (!%p1933_p7), %s2396_s2, 768, %s217_s13, [#allocation10], %s1828_s25, %s1828_s25, %s1829_s26  }
  0x29   : > { %s1682_s19 = scalar_lea.hbm %s2397_s3, 3072 }
  0x2a   : > { %p1683_p8 = scmp.ne.s32.totalorder %s2397_s3, %s1682_s19  ;;  %p1689_p5 = scmp.lt.u32.totalorder %s1682_s19, %s2397_s3 }
  0x2c   : > { %p1685_p1 = pnand %p1683_p8, %p1656_p9 }
  0x2e   : > { %p1686_p4 = pneg %p1685_p1 }
  0x30   : > { %p1691_p10 = pnand %p1689_p5, %p1686_p4 }
  0x32   : > { %1694 = shalt.err (!%p1691_p10)
}
  0x33   : > { %s1695_s13 = scalar_lea.vmem %s1937_s16, 3072  ;;  %p1703_p0 = scmp.lt.s32.totalorder %s1937_s16, %s1937_s16 }
  0x34   : > { %p1696_p11 = scmp.ne.s32.totalorder %s1937_s16, %s1695_s13  ;;  %p1704_p2 = scmp.lt.s32.totalorder %s1695_s13, %s1695_s13 }
  0x36   : > { %p1698_p12 = pnand %p1696_p11, %p1656_p9  ;;  %p1705_p3 = por %p1704_p2, %p1703_p0 }
  0x38   : > { %p1699_p13 = pneg %p1698_p12 }
  0x3a   : > { %p1706_p6 = pnand %p1705_p3, %p1699_p13 }
  0x3c   : > { %1709 = shalt.err (!%p1706_p6)
}
  0x3d   : > { %1499 = dma.hbm_to_vmem [thread:$0]  (!%p1933_p7), %s2397_s3, 3072, %s1937_s16, [#allocation10], %s1828_s25, %s1828_s25, %s1829_s26  }
  0x3e   : > { %s32_s15 = sadd.s32 1, %s1820_s30  ;;  %s44_s17 = sadd.s32 1, %s1812_s28 }
  0x3f   : > { %p33_p9 = scmp.ge.s32.totalorder %s32_s15, 3  ;;  %p51_p8 = scmp.ne.s32.totalorder %s1812_s28, %s1808_s27 }
  0x40   : > { %p52_p1 = scmp.eq.s32.totalorder %s1824_s8, 0  ;;  %p1506_p4 = scmp.lt.s32.totalorder %s1824_s8, 3 }
  0x41   : > { %s2421_s15 = smov (%p33_p9, %s32_s15), 0  ;;  %s256_s14 = sand.u32 1, %s1812_s28  }
  0x42   : > { %p53_p5 = por %p52_p1, %p51_p8  ;;  %s39_s18 = ssub.s32 %s1820_s30, %s2421_s15 }
  0x43   : > { %p42_p10 = scmp.eq.s32.totalorder %s39_s18, 0  ;;  %s1291_s19 = sshll.u32 %s256_s14, 4 }
  0x44   : > { %s1350_s20 = sshll.u32 %s1820_s30, 8  ;;  %s260_s26 = scalar_lea.vmem [#allocation6], %s1291_s19 }
  0x45   : > { %s1999_s21 = scalar_select %p42_p10, %s1812_s28, %s44_s17  }
  0x46   : > { %s2004_s25 = scalar_lea.hbm %s2395_s1, %s1350_s20  ;;  %s268_s23 = sshll.u32 %s260_s26, 4  ;;  %s2006_s23 = int_to_ptr.vmem [resolvable:$true] %s268_s23 }
  0x47   : > { %p2010_p7 = pnand %p1506_p4, %p53_p5  ;;  %s2014_s24 = scalar_lea.sflag [#allocation7], %s256_s14 }
  0x48   : > { %s1710_s12 = scalar_lea.hbm %s2004_s25, 256  ;;  %s1715_s19 = scalar_lea.hbm %s2395_s1, 768 }
  0x49   : > { %p1711_p11 = scmp.ne.s32.totalorder %s2004_s25, %s1710_s12  ;;  %p1712_p12 = pneg %p2010_p7 }
  0x4a   : > { %p1716_p2 = scmp.lt.u32.totalorder %s2004_s25, %s2395_s1  ;;  %p1717_p3 = scmp.lt.u32.totalorder %s1715_s19, %s1710_s12 }
  0x4b   : > { %p1713_p13 = pnand %p1712_p12, %p1711_p11  ;;  %p1719_p9 = scmp.lt.u32.totalorder %s1710_s12, %s2004_s25 }
  0x4c   : > { %p1718_p6 = por %p1717_p3, %p1716_p2 }
  0x4d   : > { %p1714_p0 = pneg %p1713_p13 }
  0x4e   : > { %p1720_p8 = por %p1719_p9, %p1718_p6 }
  0x50   : > { %p1721_p1 = pnand %p1720_p8, %p1714_p0 }
  0x52   : > { %1724 = shalt.err (!%p1721_p1)
}
  0x53   : > { %s1725_s14 = scalar_lea.vmem %s2006_s23, 256  ;;  %s1830_s16 = smov [#allocation6]  }
  0x54   : > { %p1726_p4 = scmp.ne.s32.totalorder %s2006_s23, %s1725_s14  ;;  %s1730_s26 = sshll.u32 %s1830_s16, 4  ;;  %s1731_s26 = int_to_ptr.vmem [resolvable:$false] %s1730_s26 }
  0x55   : > { %s1732_s17 = scalar_lea.vmem %s1731_s26, 512  ;;  %p1733_p11 = scmp.lt.s32.totalorder %s2006_s23, %s1731_s26 }
  0x56   : > { %p1728_p5 = pnand %p1726_p4, %p1712_p12  ;;  %p1734_p13 = scmp.lt.s32.totalorder %s1732_s17, %s1725_s14 }
  0x58   : > { %p1729_p10 = pneg %p1728_p5  ;;  %p1735_p2 = por %p1734_p13, %p1733_p11 }
  0x5a   : > { %p1736_p3 = pnand %p1735_p2, %p1729_p10 }
  0x5c   : > { %1739 = shalt.err (!%p1736_p3)
}
  0x5d   : > { %s1831_s12 = smov 64   ;;  %s1832_s18 = smov 4  }
  0x5e   : > { %1503 = dma.hbm_to_vmem [thread:$0]  (!%p2010_p7), %s2004_s25, 256, %s2006_s23, %s2014_s24, %s1831_s12, %s1831_s12, %s1832_s18  }
  0x5f   : > { %p2411_p12 = scmp.ne.s32.totalorder %s2408_s11, 0 }
  0x60   : > { %s282_s19 = sand.u32 (!%p2411_p12), 1, %s1808_s27   ;;  %p2412_p0 = scmp.ne.s32.totalorder (!%p2411_p12), %s2407_s10, 0 }
  0x61   : > { %280 = sbr.rel (%p2411_p12) target bundleno = 1255 (0x4e7), region = 44  ;;  %s2045_s20 = sshll.u32 (!%p2411_p12), %s282_s19, 4 }
  0x62   : > { %s283_s22 = scalar_lea.sflag (!%p2411_p12), [#allocation7], %s282_s19  ;;  %s286_s14 = scalar_lea.vmem (!%p2411_p12), [#allocation6], %s2045_s20 }
  0x68   : > { %1791 = dma.done.wait (%p2412_p0), %s283_s22, 256  }
  0x69   : > { %1793 = vsyncadd (%p2412_p0), %s283_s22, 4294967040  ;;  %p2413_p6 = scmp.ne.s32.totalorder %s2406_s9, 0 }
  0x6b   : > { %1795 = dma.done.wait (%p2413_p6), [#allocation10], 3840  }
  0x6c   : > { %1797 = vsyncadd (%p2413_p6), [#allocation10], 4294963456  ;;  %p1298_p7 = scmp.ne.s32.totalorder %s1816_s29, 0 }
  0x6d   : > { %v1833_v0 = vmov (!%p1298_p7), 0.0  }
  0x6e   : > { %331 = sbr.rel (%p1298_p7) target bundleno = 117 (0x75), region = 60  ;;  %332 = vst [vmem:[#allocation2] sm:$0xff] (!%p1298_p7), %v1833_v0 }
  0x75 PF: > { %s2058_s11 = sshll.u32 %s1816_s29, 2  ;;  %s334_s25 = sld [smem:[#allocation5]] }
  0x7b   : > { %p1300_p9 = scmp.ge.s32.totalorder %s2058_s11, %s334_s25 }
  0x7c   : > { %v1572_v1 = vld [vmem:[#allocation9 + $0x4] ss:$12 sps:$4 sm:$0xff] (!%p1300_p9)   ;;  %v1574_v2 = vld [vmem:[#allocation9] ss:$12 sps:$4 sm:$0xff] (!%p1300_p9)   ;;  %v1834_v3 = vmov (!%p1300_p9), 0   ;;  %vm410_vm0 = vcmask (!%p1300_p9), 261120   ;;  %v816_v23 = vstv (!%p1300_p9), %s2058_s11  ;;  %v353_v42 = vlaneseq (!%p1300_p9) }
  0x7d   : > { %338 = sbr.rel (%p1300_p9) target bundleno = 1221 (0x4c5), region = 64  ;;  %449 = vmatprep.mubr.bf16.mxu0 (!%p1300_p9), %v1834_v3  ;;  %1570 = vset.pattern.permute.xlu0 (!%p1300_p9), %v1834_v3  ;;  %v1575_v4 = vld [vmem:[#allocation9 + $0x1c] ss:$12 sps:$4 sm:$0xff] (!%p1300_p9)   ;;  %v1577_v5 = vld [vmem:[#allocation9 + $0x18] ss:$12 sps:$4 sm:$0xff] (!%p1300_p9)   ;;  %v1835_v18 = vmov (!%p1300_p9), 0.0  }
  0x7e   : > { %417 = vmatprep.subr.bf16.mxu0 (!%p1300_p9), %v1572_v1  ;;  %1571 = vset.pattern.permute.xlu1 (!%p1300_p9), %v1834_v3  ;;  %v1578_v6 = vld [vmem:[%s286_s14] sm:$0xff] (!%p1300_p9)   ;;  %v2072_v9 = vld [vmem:[#allocation11 + $0x1c] ss:$12 sps:$4 sm:$0xff] (!%p1300_p9)   ;;  %v2088_v16 = vld [vmem:[#allocation11 + $0x4c] ss:$12 sps:$4 sm:$0xff] (!%p1300_p9)   ;;  %s931_s9 = sadd.s32 (!%p1300_p9), 1, %s2058_s11 }
  0x7f   : > { %418 = vmatpush1.bf16.msra.mxu0 (!%p1300_p9), %v1574_v2  ;;  %v2066_v7 = vld [vmem:[#allocation11 + $0x4] ss:$12 sps:$4 sm:$0xff] (!%p1300_p9)   ;;  %1395 = vmatprep.mubr.msk.bf16.mxu1 (!%p1300_p9), %vm410_vm0, %v1578_v6  ;;  %v2069_v8 = vld [vmem:[#allocation11] ss:$12 sps:$4 sm:$0xff] (!%p1300_p9)   ;;  %v2090_v17 = vld [vmem:[#allocation11 + $0x8] ss:$12 sps:$4 sm:$0xff] (!%p1300_p9)   ;;  %v932_v24 = vstv (!%p1300_p9), %s931_s9 }
  0x80   : > { %419 = vmatprep.subr.bf16.mxu0 (!%p1300_p9), %v1575_v4  ;;  %v1593_v10 = vld [vmem:[#allocation9 + $0x8] ss:$12 sps:$4 sm:$0xff] (!%p1300_p9)   ;;  %v2080_v12 = vld [vmem:[#allocation11 + $0x34] ss:$12 sps:$4 sm:$0xff] (!%p1300_p9)   ;;  %v1598_v14 = vld [vmem:[#allocation9 + $0x20] ss:$12 sps:$4 sm:$0xff] (!%p1300_p9)  }
  0x81   : > { %v2076_v11 = vld [vmem:[#allocation11 + $0x18] ss:$12 sps:$4 sm:$0xff] (!%p1300_p9)   ;;  %1391 = vmatprep.subr.bf16.mxu1 (!%p1300_p9), %v1593_v10  ;;  %v2085_v15 = vld [vmem:[#allocation11 + $0x30] ss:$12 sps:$4 sm:$0xff] (!%p1300_p9)   ;;  %v2095_v19 = vld [vmem:[#allocation11 + $0x48] ss:$12 sps:$4 sm:$0xff] (!%p1300_p9)  }
  0x82   : > { %1392 = vmatpush3.bf16.msra.mxu1 (!%p1300_p9), %v1593_v10  ;;  %v1597_v13 = vld [vmem:[%s286_s14 + $0x8] sm:$0xff] (!%p1300_p9)   ;;  %v2100_v20 = vld [vmem:[#allocation11 + $0x64] ss:$12 sps:$4 sm:$0xff] (!%p1300_p9)   ;;  %vm1836_vm1 = vmmov (!%p1300_p9), 0   ;;  %v2132_v30 = vld [vmem:[#allocation11 + $0x94] ss:$12 sps:$4 sm:$0xff] (!%p1300_p9)  }
  0x83   : > { %420 = vmatpush1.bf16.msra.mxu0 (!%p1300_p9), %v1577_v5  ;;  %1393 = vmatprep.subr.bf16.mxu1 (!%p1300_p9), %v1598_v14  ;;  %v2104_v21 = vld [vmem:[#allocation11 + $0x20] ss:$12 sps:$4 sm:$0xff] (!%p1300_p9)   ;;  %v2114_v25 = vld [vmem:[#allocation11 + $0x7c] ss:$12 sps:$4 sm:$0xff] (!%p1300_p9)   ;;  %v2117_v26 = vld [vmem:[#allocation11 + $0x38] ss:$12 sps:$4 sm:$0xff] (!%p1300_p9)  }
  0x84   : > { %714 = vmatprep.subr.bf16.mxu0 %v2066_v7  ;;  %v2110_v22 = vld [vmem:[#allocation11 + $0x60] ss:$12 sps:$4 sm:$0xff]   ;;  %v2128_v28 = vld [vmem:[#allocation11 + $0x78] ss:$12 sps:$4 sm:$0xff]   ;;  %v2135_v31 = vld [vmem:[#allocation11 + $0x50] ss:$12 sps:$4 sm:$0xff]  }
  0x85   : > { %v2122_v27 = vld [vmem:[%s2400_s6] sm:$0xff]  ;;  %v2140_v33 = vld [vmem:[#allocation11 + $0x90] ss:$12 sps:$4 sm:$0xff]   ;;  %v2164_v40 = vld [vmem:[#allocation11 + $0x98] ss:$12 sps:$4 sm:$0xff]   ;;  %v354_v43 = vshrl.u32 %v353_v42, 7 }
  0x86   : > { %1309 = vmatmul.mubr.msk.bf16.vlgmr.msra.gmra.mrb[0].mxu0 %vm410_vm0, %v1578_v6  ;;  %1394 = vmatpush3.bf16.msra.mxu1 %v1598_v14  ;;  %vm817_vm2 = vcmp.lt.s32.totalorder %v816_v23, %v2122_v27  ;;  %vm933_vm3 = vcmp.lt.s32.totalorder %v932_v24, %v2122_v27  ;;  %v2143_v34 = vld [vmem:[#allocation11 + $0xac] ss:$12 sps:$4 sm:$0xff]   ;;  %v2146_v35 = vld [vmem:[#allocation11 + $0x68] ss:$12 sps:$4 sm:$0xff]   ;;  %v2171_v41 = vld [vmem:[#allocation11 + $0xb0] ss:$12 sps:$4 sm:$0xff]  }
  0x87   : > { %715 = vmatpush1.bf16.msra.mxu0 %v2069_v8  ;;  %459 = vmatprep.mubr.bf16.mxu0 %v1834_v3  ;;  %v818_v29 = vsel %vm817_vm2, 1, %v1834_v3  ;;  %v934_v32 = vsel %vm933_vm3, 1, %v1834_v3  ;;  %v2150_v36 = vld [vmem:[#allocation11 + $0xa8] ss:$12 sps:$4 sm:$0xff]   ;;  %v2156_v38 = vld [vmem:[#allocation11 + $0x80] ss:$12 sps:$4 sm:$0xff]  }
  0x88   : > { %716 = vmatprep.subr.bf16.mxu0 %v2072_v9  ;;  %1399 = vmatprep.subr.bf16.mxu1 %v1835_v18  ;;  %v2152_v37 = vld [vmem:[#allocation2] sm:$0xff]  ;;  %v355_v44 = vsub.s32 0, %v354_v43  ;;  %v359_v46 = vsub.s32 1, %v354_v43  ;;  %v363_v54 = vsub.s32 2, %v354_v43  ;;  %s1047_s17 = sadd.s32 2, %s2058_s11  ;;  %s1163_s12 = sadd.s32 3, %s2058_s11 }
  0x89   : > { %1396 = vmatmul.mubr.msk.bf16.vlgmr.msra.gmra.mrb[0].mxu1 %vm410_vm0, %v1597_v13  ;;  %820 = vperm.xlu0 %1570, %v818_v29   ;;  %v569_v39 = vpack.c.bf16 %v2152_v37, %v2152_v37  ;;  %v351_v45 = vld [vmem:[%s2398_s4] sm:$0x7] }
  0x8a   : > { %1400 = vmatpush3.bf16.msra.mxu1 %v2090_v17  ;;  %1415 = vmatprep.mubr.msk.bf16.mxu1 %vm1836_vm1, %v1835_v18  ;;  %v356_v47 = vrot.slane %v351_v45, %v355_v44  ;;  %v360_v50 = vrot.slane %v351_v45, %v359_v46  ;;  %v364_v56 = vrot.slane %v351_v45, %v363_v54  ;;  %v564_v14 = vld [vmem:[%s2399_s5] sm:$0x7] }
  0x8b   : > { %717 = vmatpush1.bf16.msra.mxu0 %v2076_v11  ;;  %1401 = vmatprep.subr.bf16.mxu1 %v1835_v18  ;;  %v2232_v23 = vrot.slane %v564_v14, %v355_v44  ;;  %v2234_v24 = vrot.slane %v564_v14, %v359_v46 }
  0x8c   : > { %718 = vmatprep.subr.bf16.mxu0 %v2080_v12 }
  0x8d   : > { %936 = vperm.xlu0 %1570, %v934_v32  }
  0x8e   : > { %1310 = vmatmul.mubr.msk.bf16.gmra.mrb[4].mxu0 %vm410_vm0, %v1597_v13  ;;  %1402 = vmatpush3.bf16.msra.mxu1 %v2104_v21 }
  0x8f   : > { %719 = vmatpush1.bf16.msra.mxu0 %v2085_v15  ;;  %746 = vmatprep.mubr.bf16.mxu0 %v1834_v3 }
  0x90   : > { %720 = vmatprep.subr.bf16.mxu0 %v2088_v16  ;;  %1403 = vmatprep.subr.bf16.mxu1 %v1835_v18 }
  0x92   : > { %1404 = vmatpush3.bf16.msra.mxu1 %v2117_v26 }
  0x93   : > { %721 = vmatpush1.bf16.msra.mxu0 %v2095_v19  ;;  %1405 = vmatprep.subr.bf16.mxu1 %v1835_v18 }
  0x94   : > { %722 = vmatprep.subr.bf16.mxu0 %v2100_v20 }
  0x96   : > { %1406 = vmatpush3.bf16.msra.mxu1 %v2135_v31 }
  0x97   : > { %723 = vmatpush1.bf16.msra.mxu0 %v2110_v22  ;;  %1407 = vmatprep.subr.bf16.mxu1 %v1835_v18 }
  0x98   : > { %724 = vmatprep.subr.bf16.mxu0 %v2114_v25 }
  0x9a   : > { %1408 = vmatpush3.bf16.msra.mxu1 %v2146_v35 }
  0x9b   : > { %725 = vmatpush1.bf16.msra.mxu0 %v2128_v28  ;;  %1409 = vmatprep.subr.bf16.mxu1 %v1835_v18 }
  0x9c   : > { %726 = vmatprep.subr.bf16.mxu0 %v2132_v30 }
  0x9e   : > { %1410 = vmatpush3.bf16.msra.mxu1 %v2156_v38 }
  0x9f   : > { %727 = vmatpush1.bf16.msra.mxu0 %v2140_v33  ;;  %1411 = vmatprep.subr.bf16.mxu1 %v1835_v18 }
  0xa0   : > { %728 = vmatprep.subr.bf16.mxu0 %v2143_v34 }
  0xa2   : > { %1412 = vmatpush3.bf16.msra.mxu1 %v2164_v40 }
  0xa3   : > { %729 = vmatpush1.bf16.msra.mxu0 %v2150_v36  ;;  %1413 = vmatprep.subr.bf16.mxu1 %v1835_v18 }
  0xa4   : > { %829 = vmatprep.subr.bf16.mxu0 %v2066_v7 }
  0xa6   : > { %747 = vmatmul.mubr.bf16.vlgmr.msra.gmra.mrb[8].mxu0 %v569_v39  ;;  %1414 = vmatpush3.bf16.msra.mxu1 %v2171_v41 }
  0xa7   : > { %830 = vmatpush1.bf16.msra.mxu0 %v2069_v8  ;;  %861 = vmatprep.mubr.bf16.mxu0 %v1834_v3 }
  0xa8   : > { %831 = vmatprep.subr.bf16.mxu0 %v2072_v9  ;;  %1419 = vmatprep.subr.bf16.mxu1 %v1835_v18 }
  0xa9   : > { %1416 = vmatmul.mubr.bf16.vlgmr.msra.gmra.mrb[4].mxu1 %v569_v39 }
  0xaa   : > { %1420 = vmatpush3.bf16.msra.mxu1 %v2090_v17  ;;  %1435 = vmatprep.mubr.msk.bf16.mxu1 %vm1836_vm1, %v1835_v18 }
  0xab   : > { %832 = vmatpush1.bf16.msra.mxu0 %v2076_v11  ;;  %1421 = vmatprep.subr.bf16.mxu1 %v1835_v18 }
  0xac   : > { %833 = vmatprep.subr.bf16.mxu0 %v2080_v12 }
  0xae   : > { %1422 = vmatpush3.bf16.msra.mxu1 %v2104_v21 }
  0xaf   : > { %834 = vmatpush1.bf16.msra.mxu0 %v2085_v15  ;;  %1423 = vmatprep.subr.bf16.mxu1 %v1835_v18 }
  0xb0   : > { %835 = vmatprep.subr.bf16.mxu0 %v2088_v16 }
  0xb2   : > { %1424 = vmatpush3.bf16.msra.mxu1 %v2117_v26 }
  0xb3   : > { %836 = vmatpush1.bf16.msra.mxu0 %v2095_v19  ;;  %1425 = vmatprep.subr.bf16.mxu1 %v1835_v18 }
  0xb4   : > { %837 = vmatprep.subr.bf16.mxu0 %v2100_v20 }
  0xb6   : > { %1426 = vmatpush3.bf16.msra.mxu1 %v2135_v31 }
  0xb7   : > { %838 = vmatpush1.bf16.msra.mxu0 %v2110_v22  ;;  %1427 = vmatprep.subr.bf16.mxu1 %v1835_v18 }
  0xb8   : > { %839 = vmatprep.subr.bf16.mxu0 %v2114_v25 }
  0xba   : > { %1428 = vmatpush3.bf16.msra.mxu1 %v2146_v35 }
  0xbb   : > { %840 = vmatpush1.bf16.msra.mxu0 %v2128_v28  ;;  %1429 = vmatprep.subr.bf16.mxu1 %v1835_v18 }
  0xbc   : > { %841 = vmatprep.subr.bf16.mxu0 %v2132_v30 }
  0xbe   : > { %1430 = vmatpush3.bf16.msra.mxu1 %v2156_v38 }
  0xbf   : > { %842 = vmatpush1.bf16.msra.mxu0 %v2140_v33  ;;  %1431 = vmatprep.subr.bf16.mxu1 %v1835_v18 }
  0xc0   : > { %843 = vmatprep.subr.bf16.mxu0 %v2143_v34 }
  0xc2   : > { %1432 = vmatpush3.bf16.msra.mxu1 %v2164_v40 }
  0xc3   : > { %844 = vmatpush1.bf16.msra.mxu0 %v2150_v36  ;;  %1433 = vmatprep.subr.bf16.mxu1 %v1835_v18 }
  0xc4   : > { %945 = vmatprep.subr.bf16.mxu0 %v2066_v7 }
  0xc6   : > { %1434 = vmatpush3.bf16.msra.mxu1 %v2171_v41 }
  0xc7   : > { %1439 = vmatprep.subr.bf16.mxu1 %v1835_v18 }
 0x159   : > { %v451_v48 = vpop.f32.mrb[0].mxu0 }
 0x15a   : > { %v453_v49 = vpop.f32.mrb[1].mxu0  ;;  %v452_v32 = vadd.f32 %v451_v48, %v356_v47  ;;  %v2238_v48 = vrot.slane %v564_v14, %v363_v54 }
 0x15b   : > { %v455_v51 = vpop.f32.mrb[2].mxu0  ;;  %v454_v43 = vadd.f32 %v453_v49, %v360_v50 }
 0x15c   : > { %v2211_v52 = vadd.f32 %v455_v51, %v356_v47  ;;  %v457_v53 = vpop.f32.mrb[3].mxu0  ;;  %v1397_v62 = vpop.f32.mrb[0].mxu1 }
 0x15d   : > { %v2213_v55 = vadd.f32 %v457_v53, %v360_v50  ;;  %v2221_v1 = vadd.f32 %v1397_v62, %v364_v56  ;;  %v504_v2 = vpop.f32.mrb[1].mxu1 }
 0x15e   : > { %v1398_v5 = vpop.f32.mrb[2].mxu1 }
 0x15f   : > { %v2225_v6 = vadd.f32 %v1398_v5, %v364_v56  ;;  %v507_v10 = vpop.f32.mrb[3].mxu1 }
 0x160   : > { %v2227_v13 = vadd.f32 %v507_v10, %v364_v56 }
 0x161   : > { %v461_v57 = vpop.f32.mrb[4].mxu0 }
 0x162   : > { %v2215_v58 = vadd.f32 %v461_v57, %v356_v47  ;;  %v463_v59 = vpop.f32.mrb[5].mxu0 }
 0x163   : > { %v2217_v60 = vadd.f32 %v463_v59, %v360_v50  ;;  %v465_v61 = vpop.f32.mrb[6].mxu0 }
 0x164   : > { %v2219_v63 = vadd.f32 %v465_v61, %v356_v47  ;;  %v467_v0 = vpop.f32.mrb[7].mxu0 }
 0x165   : > { %v2223_v4 = vadd.f32 %v467_v0, %v360_v50 }
 0x179   : > { %v748_v29 = vpop.f32.mrb[8].mxu0 }
 0x17a   : > { %v749_v39 = vadd.f32 %v748_v29, %v2232_v23  ;;  %v750_v42 = vpop.f32.mrb[9].mxu0 }
 0x17b   : > { %v751_v45 = vadd.f32 %v750_v42, %v2234_v24  ;;  %v752_v51 = vpop.f32.mrb[10].mxu0 }
 0x17c   : > { %v795_v53 = vadd.f32 %v749_v39, %v452_v32  ;;  %v753_v57 = vpop.f32.mrb[11].mxu0  ;;  %v789_v0 = vpop.f32.mrb[4].mxu1  ;;  %v505_v39 = vadd.f32 %v504_v2, %v364_v56  ;;  %v1164_v56 = vstv %s1163_s12 }
 0x17d   : > { %v802_v59 = vadd.f32 %v751_v45, %v454_v43  ;;  %v1417_v44 = vpop.f32.mrb[5].mxu1  ;;  %v790_v29 = vadd.f32 %v789_v0, %v2238_v48  ;;  %v821_v57 = vpop.permute.xlu0 %820  ;;  %vm1165_vm6 = vcmp.lt.s32.totalorder %v1164_v56, %v2122_v27 }
 0x17e   : > { %v1337_v61 = vmul.f32 -1.442695, %v795_v53  ;;  %v792_v5 = vpop.f32.mrb[6].mxu1  ;;  %vm822_vm4 = vcmp.eq.s32.totalorder %v821_v57, 1  ;;  %v1166_v0 = vsel %vm1165_vm6, 1, %v1834_v3 }
 0x17f   : > { %v1338_v62 = vmul.f32 -1.442695, %v802_v59  ;;  %v1418_v46 = vpop.f32.mrb[7].mxu1 }
 0x180   : > { %1614 = vpow2.f32 %v1337_v61 }
 0x181   : > { %1616 = vpow2.f32 %v1338_v62  ;;  %v937_v56 = vpop.permute.xlu0 %936 }
 0x182   : > { %vm938_vm7 = vcmp.eq.s32.totalorder %v937_v56, 1 }
 0x18a   : > { %v1615_v10 = vpop.eup %1614 }
 0x18b   : > { %v799_v47 = vadd.f32 1.0, %v1615_v10  ;;  %v1617_v49 = vpop.eup %1616 }
 0x18c   : > { %v806_v50 = vadd.f32 1.0, %v1617_v49 }
 0x18d   : > { %1618 = vrcp.f32 %v799_v47 }
 0x18e   : > { %1620 = vrcp.f32 %v806_v50 }
 0x197   : > { %v1619_v32 = vpop.eup %1618 }
 0x198   : > { %v809_v42 = vmul.f32 %v1619_v32, %v790_v29  ;;  %v1621_v45 = vpop.eup %1620 }
 0x199   : > { %v812_v51 = vsub.f32 1.0, %v1621_v45  ;;  %v814_v61 = vmul.f32 %v1621_v45, %v2152_v37 }
 0x19a   : > { %v810_v43 = vadd.f32 %v809_v42, %v505_v39 }
 0x19c   : > { %1622 = vtanh.f32 %v810_v43 }
 0x1a6   : > { %v1623_v53 = vpop.eup %1622 }
 0x1a7   : > { %v813_v59 = vmul.f32 %v1623_v53, %v812_v51 }
 0x1a9   : > { %v815_v54 = vadd.f32 %v814_v61, %v813_v59 }
 0x1ab   : > { %v2243_v14 = vsel %vm822_vm4, %v815_v54, %v2152_v37  ;;  %v1048_v37 = vstv %s1047_s17 }
 0x1ac   : > { %v828_v62 = vpack.c.bf16 %v2243_v14, %v2243_v14  ;;  %vm1049_vm5 = vcmp.lt.s32.totalorder %v1048_v37, %v2122_v27 }
 0x1ad   : > { %v1050_v2 = vsel %vm1049_vm5, 1, %v1834_v3 }
 0x1ae   : > { %862 = vmatmul.mubr.bf16.vlgmr.msra.gmra.mrb[12].mxu0 %v828_v62  ;;  %1436 = vmatmul.mubr.bf16.vlgmr.msra.gmra.mrb[8].mxu1 %v828_v62 }
 0x1af   : > { %946 = vmatpush1.bf16.msra.mxu0 %v2069_v8  ;;  %1440 = vmatpush3.bf16.msra.mxu1 %v2090_v17 }
 0x1b0   : > { %947 = vmatprep.subr.bf16.mxu0 %v2072_v9  ;;  %1441 = vmatprep.subr.bf16.mxu1 %v1835_v18 }
 0x1b1   : > { %977 = vmatprep.mubr.bf16.mxu0 %v1834_v3  ;;  %1455 = vmatprep.mubr.msk.bf16.mxu1 %vm1836_vm1, %v1835_v18 }
 0x1b2   : > { %1052 = vperm.xlu1 %1571, %v1050_v2  }
 0x1b3   : > { %948 = vmatpush1.bf16.msra.mxu0 %v2076_v11  ;;  %1442 = vmatpush3.bf16.msra.mxu1 %v2104_v21 }
 0x1b4   : > { %949 = vmatprep.subr.bf16.mxu0 %v2080_v12  ;;  %1443 = vmatprep.subr.bf16.mxu1 %v1835_v18 }
 0x1b6   : > { %1168 = vperm.xlu1 %1571, %v1166_v0  }
 0x1b7   : > { %950 = vmatpush1.bf16.msra.mxu0 %v2085_v15  ;;  %1444 = vmatpush3.bf16.msra.mxu1 %v2117_v26 }
 0x1b8   : > { %951 = vmatprep.subr.bf16.mxu0 %v2088_v16  ;;  %1445 = vmatprep.subr.bf16.mxu1 %v1835_v18 }
 0x1bb   : > { %952 = vmatpush1.bf16.msra.mxu0 %v2095_v19  ;;  %1446 = vmatpush3.bf16.msra.mxu1 %v2135_v31 }
 0x1bc   : > { %953 = vmatprep.subr.bf16.mxu0 %v2100_v20  ;;  %1447 = vmatprep.subr.bf16.mxu1 %v1835_v18 }
 0x1bf   : > { %954 = vmatpush1.bf16.msra.mxu0 %v2110_v22  ;;  %1448 = vmatpush3.bf16.msra.mxu1 %v2146_v35 }
 0x1c0   : > { %955 = vmatprep.subr.bf16.mxu0 %v2114_v25  ;;  %1449 = vmatprep.subr.bf16.mxu1 %v1835_v18 }
 0x1c3   : > { %956 = vmatpush1.bf16.msra.mxu0 %v2128_v28  ;;  %1450 = vmatpush3.bf16.msra.mxu1 %v2156_v38 }
 0x1c4   : > { %957 = vmatprep.subr.bf16.mxu0 %v2132_v30  ;;  %1451 = vmatprep.subr.bf16.mxu1 %v1835_v18 }
 0x1c7   : > { %958 = vmatpush1.bf16.msra.mxu0 %v2140_v33  ;;  %1452 = vmatpush3.bf16.msra.mxu1 %v2164_v40 }
 0x1c8   : > { %959 = vmatprep.subr.bf16.mxu0 %v2143_v34  ;;  %1453 = vmatprep.subr.bf16.mxu1 %v1835_v18 }
 0x1cb   : > { %960 = vmatpush1.bf16.msra.mxu0 %v2150_v36  ;;  %1454 = vmatpush3.bf16.msra.mxu1 %v2171_v41 }
 0x1cc   : > { %1061 = vmatprep.subr.bf16.mxu0 %v2066_v7  ;;  %1459 = vmatprep.subr.bf16.mxu1 %v1835_v18 }
 0x281   : > { %v863_v44 = vpop.f32.mrb[12].mxu0  ;;  %v904_v5 = vpop.f32.mrb[8].mxu1 }
 0x282   : > { %v864_v7 = vadd.f32 %v863_v44, %v2232_v23  ;;  %v865_v46 = vpop.f32.mrb[13].mxu0  ;;  %v1437_v10 = vpop.f32.mrb[9].mxu1  ;;  %v905_v59 = vadd.f32 %v904_v5, %v2238_v48 }
 0x283   : > { %v866_v47 = vadd.f32 %v865_v46, %v2234_v24  ;;  %v867_v49 = vpop.f32.mrb[14].mxu0  ;;  %v907_v50 = vpop.f32.mrb[10].mxu1 }
 0x284   : > { %v910_v29 = vadd.f32 %v864_v7, %v2211_v52  ;;  %v868_v32 = vpop.f32.mrb[15].mxu0  ;;  %v1438_v27 = vpop.f32.mrb[11].mxu1 }
 0x285   : > { %v917_v39 = vadd.f32 %v866_v47, %v2213_v55 }
 0x286   : > { %v1339_v42 = vmul.f32 -1.442695, %v910_v29 }
 0x287   : > { %v1340_v43 = vmul.f32 -1.442695, %v917_v39 }
 0x288   : > { %1624 = vpow2.f32 %v1339_v42 }
 0x289   : > { %1626 = vpow2.f32 %v1340_v43 }
 0x292   : > { %v1625_v45 = vpop.eup %1624 }
 0x293   : > { %v914_v51 = vadd.f32 1.0, %v1625_v45  ;;  %v1627_v53 = vpop.eup %1626 }
 0x294   : > { %v921_v57 = vadd.f32 1.0, %v1627_v53 }
 0x295   : > { %1628 = vrcp.f32 %v914_v51 }
 0x296   : > { %1630 = vrcp.f32 %v921_v57 }
 0x29f   : > { %v1629_v61 = vpop.eup %1628 }
 0x2a0   : > { %v924_v54 = vmul.f32 %v1629_v61, %v905_v59  ;;  %v1631_v62 = vpop.eup %1630 }
 0x2a1   : > { %v927_v37 = vsub.f32 1.0, %v1631_v62  ;;  %v929_v0 = vmul.f32 %v1631_v62, %v2243_v14 }
 0x2a2   : > { %v925_v52 = vadd.f32 %v924_v54, %v2227_v13 }
 0x2a4   : > { %1632 = vtanh.f32 %v925_v52 }
 0x2ae   : > { %v1633_v55 = vpop.eup %1632 }
 0x2af   : > { %v928_v2 = vmul.f32 %v1633_v55, %v927_v37 }
 0x2b1   : > { %v930_v44 = vadd.f32 %v929_v0, %v928_v2 }
 0x2b3   : > { %v2296_v7 = vsel %vm938_vm7, %v930_v44, %v2243_v14 }
 0x2b4   : > { %v944_v5 = vpack.c.bf16 %v2296_v7, %v2296_v7 }
 0x2b6   : > { %978 = vmatmul.mubr.bf16.vlgmr.msra.gmra.mrb[16].mxu0 %v944_v5  ;;  %1456 = vmatmul.mubr.bf16.vlgmr.msra.gmra.mrb[12].mxu1 %v944_v5 }
 0x2b7   : > { %1062 = vmatpush1.bf16.msra.mxu0 %v2069_v8  ;;  %1460 = vmatpush3.bf16.msra.mxu1 %v2090_v17 }
 0x2b8   : > { %1063 = vmatprep.subr.bf16.mxu0 %v2072_v9  ;;  %1461 = vmatprep.subr.bf16.mxu1 %v1835_v18 }
 0x2b9   : > { %1093 = vmatprep.mubr.bf16.mxu0 %v1834_v3  ;;  %1475 = vmatprep.mubr.msk.bf16.mxu1 %vm1836_vm1, %v1835_v18 }
 0x2bb   : > { %1064 = vmatpush1.bf16.msra.mxu0 %v2076_v11  ;;  %1462 = vmatpush3.bf16.msra.mxu1 %v2104_v21 }
 0x2bc   : > { %1065 = vmatprep.subr.bf16.mxu0 %v2080_v12  ;;  %1463 = vmatprep.subr.bf16.mxu1 %v1835_v18 }
 0x2bf   : > { %1066 = vmatpush1.bf16.msra.mxu0 %v2085_v15  ;;  %1464 = vmatpush3.bf16.msra.mxu1 %v2117_v26 }
 0x2c0   : > { %1067 = vmatprep.subr.bf16.mxu0 %v2088_v16  ;;  %1465 = vmatprep.subr.bf16.mxu1 %v1835_v18 }
 0x2c3   : > { %1068 = vmatpush1.bf16.msra.mxu0 %v2095_v19  ;;  %1466 = vmatpush3.bf16.msra.mxu1 %v2135_v31 }
 0x2c4   : > { %1069 = vmatprep.subr.bf16.mxu0 %v2100_v20  ;;  %1467 = vmatprep.subr.bf16.mxu1 %v1835_v18 }
 0x2c7   : > { %1070 = vmatpush1.bf16.msra.mxu0 %v2110_v22  ;;  %1468 = vmatpush3.bf16.msra.mxu1 %v2146_v35 }
 0x2c8   : > { %1071 = vmatprep.subr.bf16.mxu0 %v2114_v25  ;;  %1469 = vmatprep.subr.bf16.mxu1 %v1835_v18 }
 0x2cb   : > { %1072 = vmatpush1.bf16.msra.mxu0 %v2128_v28  ;;  %1470 = vmatpush3.bf16.msra.mxu1 %v2156_v38 }
 0x2cc   : > { %1073 = vmatprep.subr.bf16.mxu0 %v2132_v30  ;;  %1471 = vmatprep.subr.bf16.mxu1 %v1835_v18 }
 0x2cf   : > { %1074 = vmatpush1.bf16.msra.mxu0 %v2140_v33  ;;  %1472 = vmatpush3.bf16.msra.mxu1 %v2164_v40 }
 0x2d0   : > { %1075 = vmatprep.subr.bf16.mxu0 %v2143_v34  ;;  %1473 = vmatprep.subr.bf16.mxu1 %v1835_v18 }
 0x2d3   : > { %1076 = vmatpush1.bf16.msra.mxu0 %v2150_v36  ;;  %1474 = vmatpush3.bf16.msra.mxu1 %v2171_v41 }
 0x389   : > { %v979_v3 = vpop.f32.mrb[16].mxu0  ;;  %v1020_v8 = vpop.f32.mrb[12].mxu1 }
 0x38a   : > { %v980_v9 = vadd.f32 %v979_v3, %v2232_v23  ;;  %v981_v11 = vpop.f32.mrb[17].mxu0  ;;  %v1457_v12 = vpop.f32.mrb[13].mxu1  ;;  %v1021_v33 = vadd.f32 %v1020_v8, %v2238_v48 }
 0x38b   : > { %v982_v15 = vadd.f32 %v981_v11, %v2234_v24  ;;  %v983_v16 = vpop.f32.mrb[18].mxu0  ;;  %v1023_v17 = vpop.f32.mrb[14].mxu1 }
 0x38c   : > { %v1026_v19 = vadd.f32 %v980_v9, %v2215_v58  ;;  %v984_v20 = vpop.f32.mrb[19].mxu0  ;;  %v1458_v21 = vpop.f32.mrb[15].mxu1 }
 0x38d   : > { %v1033_v18 = vadd.f32 %v982_v15, %v2217_v60  ;;  %v1053_v58 = vpop.permute.xlu1 %1052 }
 0x38e   : > { %v1341_v22 = vmul.f32 -1.442695, %v1026_v19  ;;  %vm1054_vm8 = vcmp.eq.s32.totalorder %v1053_v58, 1 }
 0x38f   : > { %v1342_v25 = vmul.f32 -1.442695, %v1033_v18 }
 0x390   : > { %1634 = vpow2.f32 %v1341_v22 }
 0x391   : > { %1636 = vpow2.f32 %v1342_v25  ;;  %v1169_v56 = vpop.permute.xlu1 %1168 }
 0x392   : > { %vm1170_vm9 = vcmp.eq.s32.totalorder %v1169_v56, 1 }
 0x39a   : > { %v1635_v26 = vpop.eup %1634 }
 0x39b   : > { %v1030_v28 = vadd.f32 1.0, %v1635_v26  ;;  %v1637_v30 = vpop.eup %1636 }
 0x39c   : > { %v1037_v31 = vadd.f32 1.0, %v1637_v30 }
 0x39d   : > { %1638 = vrcp.f32 %v1030_v28 }
 0x39e   : > { %1640 = vrcp.f32 %v1037_v31 }
 0x3a7   : > { %v1639_v34 = vpop.eup %1638 }
 0x3a8   : > { %v1040_v35 = vmul.f32 %v1639_v34, %v1021_v33  ;;  %v1641_v38 = vpop.eup %1640 }
 0x3a9   : > { %v1043_v40 = vsub.f32 1.0, %v1641_v38  ;;  %v1045_v13 = vmul.f32 %v1641_v38, %v2296_v7 }
 0x3aa   : > { %v1041_v36 = vadd.f32 %v1040_v35, %v2221_v1 }
 0x3ac   : > { %1642 = vtanh.f32 %v1041_v36 }
 0x3b6   : > { %v1643_v41 = vpop.eup %1642 }
 0x3b7   : > { %v1044_v60 = vmul.f32 %v1643_v41, %v1043_v40 }
 0x3b9   : > { %v1046_v14 = vadd.f32 %v1045_v13, %v1044_v60 }
 0x3bb   : > { %v1055_v46 = vsel %vm1054_vm8, %v1046_v14, %v2296_v7 }
 0x3bc   : > { %v1060_v10 = vpack.c.bf16 %v1055_v46, %v1055_v46 }
 0x3be   : > { %1094 = vmatmul.mubr.bf16.vlgmr.msra.gmra.mrb[20].mxu0 %v1060_v10  ;;  %1476 = vmatmul.mubr.bf16.vlgmr.msra.gmra.mrb[16].mxu1 %v1060_v10 }
 0x491   : > { %v1095_v47 = vpop.f32.mrb[20].mxu0  ;;  %v1136_v49 = vpop.f32.mrb[16].mxu1 }
 0x492   : > { %v1096_v50 = vadd.f32 %v1095_v47, %v2232_v23  ;;  %v1097_v1 = vpop.f32.mrb[21].mxu0  ;;  %v1477_v29 = vpop.f32.mrb[17].mxu1  ;;  %v1137_v52 = vadd.f32 %v1136_v49, %v2238_v48 }
 0x493   : > { %v1098_v32 = vadd.f32 %v1097_v1, %v2234_v24  ;;  %v1099_v27 = vpop.f32.mrb[22].mxu0  ;;  %v1139_v39 = vpop.f32.mrb[18].mxu1 }
 0x494   : > { %v1142_v42 = vadd.f32 %v1096_v50, %v2219_v63  ;;  %v1100_v43 = vpop.f32.mrb[23].mxu0  ;;  %v1478_v45 = vpop.f32.mrb[19].mxu1 }
 0x495   : > { %v1149_v51 = vadd.f32 %v1098_v32, %v2223_v4 }
 0x496   : > { %v1343_v53 = vmul.f32 -1.442695, %v1142_v42 }
 0x497   : > { %v1344_v57 = vmul.f32 -1.442695, %v1149_v51 }
 0x498   : > { %1644 = vpow2.f32 %v1343_v53 }
 0x499   : > { %1646 = vpow2.f32 %v1344_v57 }
 0x4a2   : > { %v1645_v59 = vpop.eup %1644 }
 0x4a3   : > { %v1146_v61 = vadd.f32 1.0, %v1645_v59  ;;  %v1647_v23 = vpop.eup %1646 }
 0x4a4   : > { %v1153_v54 = vadd.f32 1.0, %v1647_v23 }
 0x4a5   : > { %1648 = vrcp.f32 %v1146_v61 }
 0x4a6   : > { %1650 = vrcp.f32 %v1153_v54 }
 0x4af   : > { %v1649_v24 = vpop.eup %1648 }
 0x4b0   : > { %v1156_v62 = vmul.f32 %v1649_v24, %v1137_v52  ;;  %v1651_v37 = vpop.eup %1650 }
 0x4b1   : > { %v1159_v55 = vsub.f32 1.0, %v1651_v37  ;;  %v1161_v0 = vmul.f32 %v1651_v37, %v1055_v46 }
 0x4b2   : > { %v1157_v63 = vadd.f32 %v1156_v62, %v2225_v6 }
 0x4b4   : > { %1652 = vtanh.f32 %v1157_v63 }
 0x4be   : > { %v1653_v4 = vpop.eup %1652 }
 0x4bf   : > { %v1160_v2 = vmul.f32 %v1653_v4, %v1159_v55 }
 0x4c1   : > { %v1162_v44 = vadd.f32 %v1161_v0, %v1160_v2 }
 0x4c3   : > { %v1171_v7 = vsel %vm1170_vm9, %v1162_v44, %v1055_v46 }
 0x4c4   : > { %1172 = vst [vmem:[#allocation2] sm:$0xff] %v1171_v7 }
 0x4c5 PF: > { %p1345_p8 = scmp.ne.s32.totalorder %s1816_s29, 2 }
 0x4c7   : > { %1176 = sbr.rel (%p1345_p8) target bundleno = 1230 (0x4ce), region = 68 }
 0x4cb   : > { %v1177_v48 = vld [vmem:[#allocation2] sm:$0xff] (!%p1345_p8) }
 0x4cc   : > { %1178 = vst [vmem:[#allocation12] sm:$0xff] (!%p1345_p8), %v1177_v48 }
 0x4ce PF: > { %p2350_p1 = scmp.eq.s32.totalorder %s1285_s0, 2  ;;  %s1837_s19 = smov [#allocation12]  }
 0x4cf   : > { %s1188_s20 = sshll.u32 %s1837_s19, 4  ;;  %s1189_s20 = int_to_ptr.vmem [resolvable:$true] %s1188_s20 }
 0x4d0   : > { %s1740_s22 = scalar_lea.vmem %s1189_s20, 128  ;;  %p1747_p11 = scmp.lt.s32.totalorder %s1189_s20, %s1189_s20 }
 0x4d1   : > { %p1741_p4 = scmp.ne.s32.totalorder %s1189_s20, %s1740_s22  ;;  %p1748_p13 = scmp.lt.s32.totalorder %s1740_s22, %s1740_s22 }
 0x4d3   : > { %p1742_p5 = pnand %p1741_p4, %p2350_p1  ;;  %p1749_p2 = por %p1748_p13, %p1747_p11 }
 0x4d5   : > { %p1743_p10 = pneg %p1742_p5 }
 0x4d7   : > { %p1750_p3 = pnand %p1749_p2, %p1743_p10 }
 0x4d9   : > { %1753 = shalt.err (!%p1750_p3)
}
 0x4da   : > { %s1754_s0 = scalar_lea.hbm %s2401_s7, 128 }
 0x4db   : > { %p1755_p12 = scmp.ne.s32.totalorder %s2401_s7, %s1754_s0  ;;  %p1760_p7 = scmp.lt.u32.totalorder %s1754_s0, %s2401_s7 }
 0x4dd   : > { %p1756_p0 = pnand %p1755_p12, %p2350_p1 }
 0x4df   : > { %p1757_p6 = pneg %p1756_p0 }
 0x4e1   : > { %p1762_p9 = pnand %p1760_p7, %p1757_p6 }
 0x4e3   : > { %1765 = shalt.err (!%p1762_p9)
}
 0x4e4   : > { %1490 = dma.vmem_to_hbm [thread:$0]  (%p2350_p1), %s1189_s20, 128, %s2401_s7, [#allocation8]  }
 0x4e5   : > { %1799 = dma.done.wait (%p2350_p1), [#allocation8], 128  }
 0x4e6   : > { %1801 = vsyncadd (%p2350_p1), [#allocation8], 4294967168 }
 0x4e7 PF: > { %s23_s8 = sadd.s32 1, %s1824_s8   ;;  %s2415_s26 = smov %s1808_s27 }
 0x4e8   : > { %p20_p8 = scmp.ge.s32.totalorder %s23_s8, 5   ;;  %s2416_s27 = smov %s1812_s28 }
 0x4e9   : > { %s2417_s28 = smov %s1999_s21  ;;  %s2418_s29 = smov %s1820_s30 }
 0x4ea   : > { %s2419_s30 = smov %s2421_s15  ;;  %22 = sbr.rel (!%p20_p8) target bundleno = 8 (0x8), region = 108 }
 0x4f1   :  { %1201 = vsyncpa [#allocation7], 1 }
 0x4f2   :  { %1203 = vsyncpa [#allocation7 + $0x1], 1 }
 0x4f3   :  { %1204 = vsyncpa [#allocation10], 1 }
 0x4f4   :  { %1205 = vsyncpa [#allocation8], 1 }
 0x4f5   :  { %1207 = vsyncpa [#allocation8 + $0x1], 1 }

</bundles_post_ra>
